<compile_context>
chip_gen: v7x
topology: tpu7x:2x2x1
jax: 0.10.0
libtpu: 0.0.40
codegen_flags: <defaults>
</compile_context>

<pallas_src>
import functools

import jax
import jax.numpy as jnp
from jax.experimental import pallas as pl
from jax.experimental.pallas import tpu as pltpu


def _ce_label_smooth_kernel(x_ref, t_ref, loss_ref, *, num_classes: int,
                            epsilon: float):
    # x_ref: (TB, C) logits tile (native dtype), t_ref: (TB, 1) int32 labels.
    x = x_ref[...]
    xf = x.astype(jnp.float32)          # no-op for f32 inputs
    t = t_ref[...]                      # (TB, 1) int32

    # Fused reductions on the raw logits (no `shifted` full-width temporary).
    m = jnp.max(xf, axis=1, keepdims=True)                        # (TB, 1)
    sum_x = jnp.sum(xf, axis=1, keepdims=True)                    # (TB, 1) f32
    cls_idx = jax.lax.broadcasted_iota(jnp.int32, x.shape, 1)     # (TB, C)
    tgt_x = jnp.sum(jnp.where(cls_idx == t, xf, 0.0),
                    axis=1, keepdims=True)                        # (TB, 1)

    # Only the exp pass touches (x - m); stable logsumexp.
    lse = jnp.log(jnp.sum(jnp.exp(xf - m), axis=1, keepdims=True))
    logz = m + lse                                                # (TB, 1)

    # loss = logz - (1-eps)*x[target] - (eps/C)*sum(x)
    loss = logz - (1.0 - epsilon) * tgt_x - (epsilon / num_classes) * sum_x
    loss_ref[...] = loss                                          # (TB, 1)


def _vmem_capacity_bytes():
    # Trace-time hardware query; fall back to the smallest per-core VMEM
    # (v7x, 64 MiB) so the derived limits are always safe.
    try:
        cap = int(getattr(pltpu.get_tpu_info(), "vmem_capacity_bytes", 0) or 0)
        if cap > 0:
            return cap
    except Exception:
        pass
    return 64 << 20


def _choose_tiling(B, C, itemsize, block_rows=None):
    """Returns (tile_rows, vmem_limit_bytes)."""
    capacity = _vmem_capacity_bytes()
    if capacity >= (100 << 20):      # v5e / v6e: 128 MiB physical VMEM
        vmem_target = 96 << 20
    else:                            # v7x: 64 MiB per TensorCore
        vmem_target = 48 << 20
    tile_budget = (vmem_target * 3) // 4

    # Per-row VMEM cost: 2-deep pipelined logits buffers in their HBM dtype,
    # ~4 full-width f32-sized temporaries (iota / select / cast / exp), and
    # the lane-padded (tb, 1) targets + loss tiles (2 buffers each, 128 lanes).
    per_row = C * (2 * itemsize + 4 * 4) + 4 * 128 * 4

    if block_rows is not None:
        tb = int(block_rows)
    else:
        tb = tile_budget // per_row
        tb = max(16, (tb // 16) * 16)    # valid sublane tiling for f32/bf16

    if tb >= B:
        if B >= 32:
            # Keep >= 2 grid steps so the "parallel" batch axis can be
            # sharded across both v7x TensorCores.
            half = (B + 1) // 2
            tb = ((half + 15) // 16) * 16
        else:
            tb = B                       # block == full dim satisfies tiling

    est = per_row * tb + (2 << 20)       # headroom
    vmem_limit = int(min(vmem_target, max(8 << 20, est)))
    return tb, vmem_limit


def cross_entropy_label_smooth(inputs, targets, *, num_classes, epsilon=0.1,
                               reduction=True, block_rows=None):
    """inputs: (B, C) float logits, targets: (B,) int labels."""
    B, C = inputs.shape
    assert C == num_classes
    t2d = targets.astype(jnp.int32).reshape(B, 1)

    itemsize = jnp.dtype(inputs.dtype).itemsize
    tb, vmem_limit = _choose_tiling(B, C, itemsize, block_rows)
    nb = pl.cdiv(B, tb)

    kernel = functools.partial(_ce_label_smooth_kernel,
                               num_classes=num_classes, epsilon=epsilon)

    per_sample = pl.pallas_call(
        kernel,
        out_shape=jax.ShapeDtypeStruct((B, 1), jnp.float32),
        grid=(nb,),
        in_specs=[
            pl.BlockSpec((tb, C), lambda i: (i, 0)),
            pl.BlockSpec((tb, 1), lambda i: (i, 0)),
        ],
        out_specs=pl.BlockSpec((tb, 1), lambda i: (i, 0)),
        compiler_params=pltpu.CompilerParams(
            dimension_semantics=("parallel",),
            vmem_limit_bytes=vmem_limit),
    )(inputs, t2d)

    loss = per_sample[:, 0]
    if reduction:
        # Batch mean done in JAX on a tiny (B,) vector; keeps the batch grid
        # axis "parallel" (megacore on v7x).
        return jnp.mean(loss)
    return loss


def _reference(inputs, targets, num_classes, epsilon=0.1, reduction=True):
    log_probs = jax.nn.log_softmax(inputs.astype(jnp.float32), axis=1)
    onehot = jax.nn.one_hot(targets, num_classes, dtype=jnp.float32)
    t = (1.0 - epsilon) * onehot + epsilon / num_classes
    loss = jnp.sum(-t * log_probs, axis=1)
    return jnp.mean(loss) if reduction else loss


if __name__ == "__main__":
    key = jax.random.PRNGKey(0)
    epsilon = 0.1

    # --- small shapes consistent with the module (single tile) ---
    num_classes = 32
    batch = 8
    k_x, k_t, k_x2, k_t2, k_x4, k_t4 = jax.random.split(key, 6)
    x = jax.random.normal(k_x, (batch, num_classes), dtype=jnp.float32)
    targets = jax.random.randint(k_t, (batch,), 0, num_classes,
                                 dtype=jnp.int32)

    out = jax.block_until_ready(cross_entropy_label_smooth(
        x, targets, num_classes=num_classes, epsilon=epsilon, reduction=True))
    ref = _reference(x, targets, num_classes, epsilon, reduction=True)
    assert jnp.allclose(out, ref, atol=1e-5, rtol=1e-5), (out, ref)

    out_vec = jax.block_until_ready(cross_entropy_label_smooth(
        x, targets, num_classes=num_classes, epsilon=epsilon, reduction=False))
    ref_vec = _reference(x, targets, num_classes, epsilon, reduction=False)
    assert jnp.allclose(out_vec, ref_vec, atol=1e-5, rtol=1e-5)

    # --- multi-tile grid path (partial last batch tile: 40 = 16 + 16 + 8) ---
    B2, C2 = 40, 256
    x2 = jax.random.normal(k_x2, (B2, C2), dtype=jnp.float32)
    t2 = jax.random.randint(k_t2, (B2,), 0, C2, dtype=jnp.int32)

    out2 = jax.block_until_ready(cross_entropy_label_smooth(
        x2, t2, num_classes=C2, epsilon=epsilon, reduction=True,
        block_rows=16))
    ref2 = _reference(x2, t2, C2, epsilon, reduction=True)
    assert jnp.allclose(out2, ref2, atol=1e-5, rtol=1e-5), (out2, ref2)

    out2_vec = jax.block_until_ready(cross_entropy_label_smooth(
        x2, t2, num_classes=C2, epsilon=epsilon, reduction=False,
        block_rows=16))
    ref2_vec = _reference(x2, t2, C2, epsilon, reduction=False)
    assert jnp.allclose(out2_vec, ref2_vec, atol=1e-5, rtol=1e-5)

    # --- bf16 logits stay bf16 in HBM; kernel upcasts after load ---
    x3 = x2.astype(jnp.bfloat16)
    out3 = jax.block_until_ready(cross_entropy_label_smooth(
        x3, t2, num_classes=C2, epsilon=epsilon, reduction=True,
        block_rows=16))
    ref3 = _reference(x3.astype(jnp.float32), t2, C2, epsilon, reduction=True)
    assert jnp.allclose(out3, ref3, atol=1e-4, rtol=1e-4), (out3, ref3)

    # --- auto tiling: B >= 32 splits into >= 2 tiles; C not a multiple of 128
    B4, C4 = 64, 200
    x4 = jax.random.normal(k_x4, (B4, C4), dtype=jnp.float32)
    t4 = jax.random.randint(k_t4, (B4,), 0, C4, dtype=jnp.int32)
    out4 = jax.block_until_ready(cross_entropy_label_smooth(
        x4, t4, num_classes=C4, epsilon=epsilon, reduction=True))
    ref4 = _reference(x4, t4, C4, epsilon, reduction=True)
    assert jnp.allclose(out4, ref4, atol=1e-5, rtol=1e-5), (out4, ref4)

    print("KERNEL_OK")
</pallas_src>

<mosaic_0001>
module attributes {stable_mosaic.version = 11 : i64} {
  func.func @_ce_label_smooth_kernel(%arg0: i32, %arg1: memref<8x32xf32, #tpu.memory_space<vmem>>, %arg2: memref<8x1xi32, #tpu.memory_space<vmem>>, %arg3: memref<8x1xf32, #tpu.memory_space<vmem>>) attributes {dimension_semantics = [#tpu.dimension_semantics<parallel>], iteration_bounds = array<i64: 1>, scalar_prefetch = 0 : i64, scratch_operands = 0 : i64, tpu.core_type = #tpu.core_type<tc>, window_params = [{transform_indices = @transform_0, window_bounds = array<i64: 8, 32>}, {transform_indices = @transform_1, window_bounds = array<i64: 8, 1>}, {transform_indices = @transform_2, window_bounds = array<i64: 8, 1>}]} {
    %c0 = arith.constant 0 : index
    %c0_0 = arith.constant 0 : index
    %0 = vector.load %arg1[%c0, %c0_0] : memref<8x32xf32, #tpu.memory_space<vmem>>, vector<8x32xf32>
    %c0_1 = arith.constant 0 : index
    %c0_2 = arith.constant 0 : index
    %1 = vector.load %arg2[%c0_1, %c0_2] : memref<8x1xi32, #tpu.memory_space<vmem>>, vector<8x1xi32>
    %cst = arith.constant dense<0xFF800000> : vector<8xf32>
    %2 = vector.multi_reduction <maximumf>, %0, %cst [1] : vector<8x32xf32> to vector<8xf32>
    %3 = vector.shape_cast %2 : vector<8xf32> to vector<8x1xf32>
    %cst_3 = arith.constant dense<0.000000e+00> : vector<8xf32>
    %4 = vector.multi_reduction <add>, %0, %cst_3 [1] : vector<8x32xf32> to vector<8xf32>
    %5 = vector.shape_cast %4 : vector<8xf32> to vector<8x1xf32>
    %6 = tpu.iota {dimensions = array<i32: 1>} : vector<8x32xi32>
    %7 = vector.broadcast %1 : vector<8x1xi32> to vector<8x32xi32>
    %8 = arith.cmpi eq, %6, %7 : vector<8x32xi32>
    %cst_4 = arith.constant 0.000000e+00 : f32
    %9 = vector.broadcast %cst_4 : f32 to vector<8x32xf32>
    %10 = arith.select %8, %0, %9 : vector<8x32xi1>, vector<8x32xf32>
    %cst_5 = arith.constant dense<0.000000e+00> : vector<8xf32>
    %11 = vector.multi_reduction <add>, %10, %cst_5 [1] : vector<8x32xf32> to vector<8xf32>
    %12 = vector.shape_cast %11 : vector<8xf32> to vector<8x1xf32>
    %13 = vector.broadcast %3 : vector<8x1xf32> to vector<8x32xf32>
    %14 = arith.subf %0, %13 : vector<8x32xf32>
    %15 = math.exp %14 : vector<8x32xf32>
    %cst_6 = arith.constant dense<0.000000e+00> : vector<8xf32>
    %16 = vector.multi_reduction <add>, %15, %cst_6 [1] : vector<8x32xf32> to vector<8xf32>
    %17 = vector.shape_cast %16 : vector<8xf32> to vector<8x1xf32>
    %18 = math.log %17 : vector<8x1xf32>
    %19 = arith.addf %3, %18 : vector<8x1xf32>
    %cst_7 = arith.constant 0.899999976 : f32
    %20 = vector.broadcast %cst_7 : f32 to vector<8x1xf32>
    %21 = arith.mulf %20, %12 : vector<8x1xf32>
    %22 = arith.subf %19, %21 : vector<8x1xf32>
    %cst_8 = arith.constant 3.125000e-03 : f32
    %23 = vector.broadcast %cst_8 : f32 to vector<8x1xf32>
    %24 = arith.mulf %23, %5 : vector<8x1xf32>
    %25 = arith.subf %22, %24 : vector<8x1xf32>
    %c0_9 = arith.constant 0 : index
    %c0_10 = arith.constant 0 : index
    %26 = vector.load %arg3[%c0_9, %c0_10] : memref<8x1xf32, #tpu.memory_space<vmem>>, vector<8x1xf32>
    tpu.vector_store %arg3[%c0_9, %c0_10], %25 {strides = array<i32>} : memref<8x1xf32, #tpu.memory_space<vmem>>, vector<8x1xf32>,
    return
  }
  func.func @transform_0(%arg0: i32) -> (i32, i32) {
    %c0_i32 = arith.constant 0 : i32
    %c0_i32_0 = arith.constant 0 : i32
    return %arg0, %c0_i32 : i32, i32
  }
  func.func @transform_1(%arg0: i32) -> (i32, i32) {
    %c0_i32 = arith.constant 0 : i32
    %c0_i32_0 = arith.constant 0 : i32
    return %arg0, %c0_i32 : i32, i32
  }
  func.func @transform_2(%arg0: i32) -> (i32, i32) {
    %c0_i32 = arith.constant 0 : i32
    %c0_i32_0 = arith.constant 0 : i32
    return %arg0, %c0_i32 : i32, i32
  }
}

</mosaic_0001>

<bundles_post_ra>
// kernel: tpu_custom_call.1
= control target key start
LH: loop header
LB: loop body
LE: loop exit
PB: predicated region body
PF: predicated region fallthrough
CT: control target
= control target key end

     0   :  { %vm13_vm0 = vcmask 261120   ;;  %v55_v1 = vmov 0   ;;  %v20_v7 = vlaneseq  ;;  %vm43_vm2 = vcmask 7168   ;;  %s84_s0 = inlined_call_operand.vmem [shape: f32[8,32], index: 0, kind: input, shape index: {}]   ;;  %s85_s1 = inlined_call_operand.vmem [shape: s32[8,1], index: 1, kind: input, shape index: {}]   ;;  %s86_s2 = inlined_call_operand.vmem [shape: f32[8,1], index: 2, kind: output, shape index: {}]  }
   0x1   :  { %v11_v0 = vld [vmem:[%s84_s0] sm:$0xff]  ;;  %50 = vset.pattern.permute.xlu0 %v55_v1 }
   0x2   :  { %v14_v2 = vsel %vm13_vm0, %v11_v0, -inf  ;;  %v12_v3 = vld [vmem:[%s85_s1] sm:$0xff]  ;;  %v21_v8 = vand.u32 127, %v20_v7  ;;  %v17_v14 = vsel %vm13_vm0, %v11_v0, 0.0 }
   0x3   :  { %15 = vmax.xlane.f32.xlu0 %v14_v2 }
  0x19   :  { %23 = vperm.xlu0 %50, %v12_v3  }
  0x90   :  { %v16_v4 = vpop.xlane.xlu0 %15 }
  0x91   :  { %v30_v5 = vsub.f32 %v11_v0, %v16_v4 }
  0x93   :  { %v31_v6 = vmul.f32 1.442695, %v30_v5 }
  0x95   :  { %51 = vpow2.f32 %v31_v6 }
  0x98   :  { %v24_v9 = vpop.permute.xlu0 %23 }
  0x99   :  { %vm25_vm1 = vcmp.eq.s32.totalorder %v21_v8, %v24_v9 }
  0x9a   :  { %v26_v11 = vsel %vm25_vm1, %v11_v0, 0.0 }
  0x9b   :  { %v27_v13 = vsel %vm13_vm0, %v26_v11, 0.0 }
  0x9f   :  { %v52_v10 = vpop.eup %51 }
  0xa0   :  { %v33_v12 = vsel %vm13_vm0, %v52_v10, 0.0 }
  0xa1   :  { %34 = vadd.xlane.f32.xlu1 %v33_v12 }
  0xa5   :  { %28 = vadd.xlane.f32.xlu1 %v27_v13 }
  0xa9   :  { %18 = vadd.xlane.f32.xlu1 %v17_v14 }
 0x12e   :  { %v35_v15 = vpop.xlane.xlu1 %34 }
 0x12f   :  { %53 = vlog2.f32 %v35_v15 }
 0x132   :  { %v29_v16 = vpop.xlane.xlu1 %28 }
 0x133   :  { %v39_v21 = vmul.f32 0.9, %v29_v16 }
 0x136   :  { %v19_v18 = vpop.xlane.xlu1 %18 }
 0x137   :  { %v41_v22 = vmul.f32 0.003125, %v19_v18 }
 0x139   :  { %v54_v17 = vpop.eup %53 }
 0x13a   :  { %v37_v19 = vmul.f32 0.6931472, %v54_v17 }
 0x13c   :  { %v38_v20 = vadd.f32 %v37_v19, %v16_v4 }
 0x13e   :  { %v40_v23 = vsub.f32 %v38_v20, %v39_v21 }
 0x140   :  { %v42_v24 = vsub.f32 %v40_v23, %v41_v22 }
 0x142   :  { %44 = vst.msk [vmem:[%s86_s2] sm:$0xff] %vm43_vm2, %v42_v24 }

</bundles_post_ra>
